<compile_context>
chip_gen: v6e
topology: v6e:2x2x1
jax: 0.10.0
libtpu: 0.0.40
codegen_flags: <defaults>
</compile_context>

<pallas_src>
import jax
import jax.numpy as jnp
from jax.experimental import pallas as pl
from jax.experimental.pallas import tpu as pltpu


# ------------------------------ tiling helpers -------------------------------


def _divisor_tile(dim, pref, aligns):
    """Largest tile <= pref that divides dim and is a multiple of one of
    `aligns` (tried in order).  Falls back to the full dim."""
    if dim <= pref:
        return dim
    for align in aligns:
        t = (pref // align) * align
        while t >= align:
            if dim % t == 0:
                return t
            t -= align
    # TODO(synk): for large prime-ish dims this returns one huge block; a
    # padded/masked tail path would be needed to bound VMEM in that case.
    return dim


def _pick_tm(M, pref):
    # Keep >= 2 blocks along the (parallel) M axis when possible so both v7x
    # TensorCores get work under dimension_semantics=("parallel", ...).
    if M >= 16:
        pref = min(pref, M // 2)
    return _divisor_tile(M, pref, (8,))


def _pick_h_tile(H, W, C, budget_bytes=4 * 1024 * 1024):
    """Rows per conv tile so one f32 (th, W, C) slab stays under ~4 MiB.
    With double-buffered bf16 I/O + the f32 halo scratch this keeps the conv
    working set well inside the 48 MiB limit on every generation (incl. v7x's
    64 MiB physical VMEM).  Keep W a multiple of 8 where possible so the
    (th, W, C) -> (th*W, C) flatten is a pure relabel."""
    max_rows = max(1, budget_bytes // (W * C * 4))
    th = min(H, max_rows)
    while H % th != 0:
        th -= 1
    return th


def _round_up(n, m):
    return ((n + m - 1) // m) * m


def _pad_axis(a, axis, target):
    n = a.shape[axis]
    if n == target:
        return a
    pad = [(0, 0)] * a.ndim
    pad[axis] = (0, target - n)
    return jnp.pad(a, pad)


# ----------------------------- tiled linear (MXU) -----------------------------


def _matmul_kernel(x_ref, w_ref, b_ref, o_ref, acc_ref):
    k = pl.program_id(2)

    @pl.when(k == 0)
    def _():
        acc_ref[...] = jnp.zeros_like(acc_ref)

    a = x_ref[...]
    if a.dtype == jnp.float32:
        # Only fc1's f32 input activations hit this (trace-time branch);
        # weights and fc2's activations arrive pre-cast to bf16.
        a = a.astype(jnp.bfloat16)
    acc_ref[...] += jnp.dot(a, w_ref[...], preferred_element_type=jnp.float32)

    @pl.when(k == pl.num_programs(2) - 1)
    def _():
        o_ref[...] = (acc_ref[...] + b_ref[...].astype(jnp.float32)).astype(o_ref.dtype)


def linear(x, w, b, *, out_dtype, tm_pref=512, tn_pref=512, tk_pref=1024):
    """x: (M, K) @ w: (K, N) + b: (1, N), tiled and pipelined.  w is expected
    to be pre-cast to bf16; accumulation is f32; output dtype is out_dtype."""
    M, K = x.shape
    N = w.shape[1]
    tm = _pick_tm(M, tm_pref)
    # Prefer 256-aligned tn/tk (v6e/v7x 256x256 MXU); 128 fallback (v5e).
    tn = _divisor_tile(N, tn_pref, (256, 128))
    tk = _divisor_tile(K, tk_pref, (256, 128))
    grid = (M // tm, N // tn, K // tk)

    x_bytes = jnp.dtype(x.dtype).itemsize
    w_bytes = jnp.dtype(w.dtype).itemsize
    o_bytes = jnp.dtype(out_dtype).itemsize

    return pl.pallas_call(
        _matmul_kernel,
        out_shape=jax.ShapeDtypeStruct((M, N), out_dtype),
        grid_spec=pltpu.PrefetchScalarGridSpec(
            num_scalar_prefetch=0,
            grid=grid,
            in_specs=[
                pl.BlockSpec((tm, tk), lambda i, j, k: (i, k)),
                pl.BlockSpec((tk, tn), lambda i, j, k: (k, j)),
                pl.BlockSpec((1, tn), lambda i, j, k: (0, j)),
            ],
            out_specs=pl.BlockSpec((tm, tn), lambda i, j, k: (i, j)),
            scratch_shapes=[pltpu.VMEM((tm, tn), jnp.float32)],
        ),
        compiler_params=pltpu.CompilerParams(
            dimension_semantics=("parallel", "parallel", "arbitrary"),
            vmem_limit_bytes=48 * 1024 * 1024,
        ),
        cost_estimate=pl.CostEstimate(
            flops=2 * M * N * K,
            transcendentals=0,
            bytes_accessed=x_bytes * M * K + w_bytes * K * N + o_bytes * M * N,
        ),
    )(x, w, b)


# -------------------- row-tiled depthwise 3x3 conv + GELU ---------------------


def _dwconv_gelu_kernel(x_ref, top_ref, bot_ref, w_ref, b_ref, o_ref, xs_ref):
    # x   : (1, th, W, C)   current row tile (bf16 or f32)
    # top : (1, 1, W, C)    row just above the tile (clamped at the image top)
    # bot : (1, 1, W, C)    row just below the tile (clamped at the bottom)
    # w   : (3, 3, C), b: (1, 1, C)
    # o   : (1, th, W, C) = GELU(depthwise_conv3x3(x) + b)
    # xs  : (th+2, W, C) f32 halo scratch (replaces the jnp.concatenate copies)
    _, th, W, C = o_ref.shape
    R = th * W
    i = pl.program_id(1)
    nh = pl.num_programs(1)

    # Assemble the vertically-haloed f32 working slab once; this also performs
    # the single bf16->f32 upcast.  Halo rows outside the image are zeroed.
    xs_ref[1:th + 1] = x_ref[0].astype(jnp.float32)
    xs_ref[0:1] = jnp.where(i > 0, top_ref[0].astype(jnp.float32), 0.0)
    xs_ref[th + 1:th + 2] = jnp.where(i < nh - 1, bot_ref[0].astype(jnp.float32), 0.0)

    w = w_ref[...].astype(jnp.float32)                        # (3, 3, C)

    x_up = xs_ref[0:th]          # input row r-1 for every output row r
    x_md = xs_ref[1:th + 1]      # input row r
    x_dn = xs_ref[2:th + 2]      # input row r+1

    # Weights are per-channel, so the horizontal shift commutes with the
    # weighted vertical sum: pre-accumulate one (R, C) slab per tap column.
    def vsum(dx):
        return (x_up * w[0, dx] + x_md * w[1, dx] + x_dn * w[2, dx]).reshape(R, C)

    a_left, a_mid, a_right = vsum(0), vsum(1), vsum(2)

    # Horizontal taps via XLU roll on the flattened (th*W, C) layout.  Wrapped
    # entries land exactly on the masked image-boundary columns.  Masks are
    # computed once and reused for both selects.
    col = jax.lax.broadcasted_iota(jnp.int32, (th, W, 1), 1).reshape(R, 1)
    left_ok = col > 0
    right_ok = col < W - 1

    acc = a_mid
    acc = acc + jnp.where(left_ok, pltpu.roll(a_left, 1 % R, axis=0), 0.0)
    acc = acc + jnp.where(right_ok, pltpu.roll(a_right, (R - 1) % R, axis=0), 0.0)
    acc = acc + b_ref[0, 0].astype(jnp.float32)

    # PyTorch nn.GELU() default is the exact (erf-based) GELU.
    out = jax.nn.gelu(acc, approximate=False)
    o_ref[0] = out.reshape(th, W, C).astype(o_ref.dtype)


def dwconv3x3_gelu(x_nhwc, w_hwc, b_c):
    """Depthwise 3x3 conv (padding=1) + exact GELU.  x: (B, H, W, C)."""
    B, H, W, C = x_nhwc.shape
    th = _pick_h_tile(H, W, C)
    nh = H // th
    b_111c = b_c.reshape(1, 1, C)
    elem = B * H * W * C
    io_bytes = jnp.dtype(x_nhwc.dtype).itemsize

    return pl.pallas_call(
        _dwconv_gelu_kernel,
        out_shape=jax.ShapeDtypeStruct((B, H, W, C), x_nhwc.dtype),
        grid_spec=pltpu.PrefetchScalarGridSpec(
            num_scalar_prefetch=0,
            grid=(B, nh),
            in_specs=[
                pl.BlockSpec((1, th, W, C), lambda b, i: (b, i, 0, 0)),
                # one-row halos (block size 1 along H => block index == row index)
                pl.BlockSpec((1, 1, W, C),
                             lambda b, i: (b, jnp.maximum(i * th - 1, 0), 0, 0)),
                pl.BlockSpec((1, 1, W, C),
                             lambda b, i: (b, jnp.minimum((i + 1) * th, H - 1), 0, 0)),
                pl.BlockSpec((3, 3, C), lambda b, i: (0, 0, 0)),
                pl.BlockSpec((1, 1, C), lambda b, i: (0, 0, 0)),
            ],
            out_specs=pl.BlockSpec((1, th, W, C), lambda b, i: (b, i, 0, 0)),
            scratch_shapes=[pltpu.VMEM((th + 2, W, C), jnp.float32)],
        ),
        compiler_params=pltpu.CompilerParams(
            dimension_semantics=("parallel", "parallel"),
            vmem_limit_bytes=48 * 1024 * 1024,
        ),
        cost_estimate=pl.CostEstimate(
            flops=19 * elem,               # 9 FMAs + bias per element
            transcendentals=elem,          # erf GELU
            bytes_accessed=2 * io_bytes * elem,
        ),
    )(x_nhwc, x_nhwc, x_nhwc, w_hwc, b_111c)


# ------------------------------ module wrapper --------------------------------


def mix_feedforward(x, h, w, params):
    """x: (B, N, in_features) with N == h*w.  Dropout p=0.0 -> identity."""
    B, N, Cin = x.shape
    assert N == h * w
    hidden = params["fc1_w"].shape[1]
    out_f = params["fc2_w"].shape[1]

    # Lane-dense padding: round the hidden / output channel dims up to a
    # multiple of 128 so all matmul / conv output stores are unmasked.  Padded
    # hidden channels carry exact zeros through conv + GELU, and the padded
    # fc2 rows / cols are zero, so the valid slice is unchanged.
    hid_p = _round_up(hidden, 128)
    out_p = _round_up(out_f, 128)

    # One-time weight prep (plain JAX, tiny arrays): pad + pre-cast matmul
    # weights to bf16 so the kernels never re-cast a weight tile per step.
    fc1_w = _pad_axis(params["fc1_w"], 1, hid_p).astype(jnp.bfloat16)
    fc1_b = _pad_axis(params["fc1_b"], 1, hid_p)
    conv_w = _pad_axis(params["conv_w"], 2, hid_p)
    conv_b = _pad_axis(params["conv_b"], 0, hid_p)
    fc2_w = _pad_axis(_pad_axis(params["fc2_w"], 0, hid_p), 1, out_p).astype(jnp.bfloat16)
    fc2_b = _pad_axis(params["fc2_b"], 1, out_p)

    # fc1 -> hidden activation stored in bf16 (it crosses HBM 4x).
    y = linear(x.reshape(B * N, Cin), fc1_w, fc1_b, out_dtype=jnp.bfloat16)
    # 'b (h w) c -> b c h w' in NCHW  ==  (B, h, w, hidden) in our NHWC layout
    y = y.reshape(B, h, w, hid_p)
    # depthwise conv + GELU (fused, halo handled in-kernel), f32 math, bf16 out
    y = dwconv3x3_gelu(y, conv_w, conv_b)
    # 'b c h w -> b (h w) c'
    y = y.reshape(B * N, hid_p)
    # fc2 back to the input dtype
    out = linear(y, fc2_w, fc2_b, out_dtype=x.dtype)
    return out[:, :out_f].reshape(B, N, out_f)


def make_params(key, in_features, out_features, hidden_features, dtype=jnp.float32):
    k1, k2, k3, k4, k5, k6 = jax.random.split(key, 6)
    scale = 0.1
    return {
        # nn.Linear(in, hidden): torch weight is (hidden, in); stored here as (in, hidden)
        "fc1_w": scale * jax.random.normal(k1, (in_features, hidden_features), dtype),
        "fc1_b": scale * jax.random.normal(k2, (1, hidden_features), dtype),
        # nn.Conv2d(hidden, hidden, 3, padding=1, groups=hidden): torch (hidden,1,3,3)
        # stored channels-last as (3, 3, hidden)
        "conv_w": scale * jax.random.normal(k3, (3, 3, hidden_features), dtype),
        "conv_b": scale * jax.random.normal(k4, (hidden_features,), dtype),
        # nn.Linear(hidden, out)
        "fc2_w": scale * jax.random.normal(k5, (hidden_features, out_features), dtype),
        "fc2_b": scale * jax.random.normal(k6, (1, out_features), dtype),
    }


# ---------------------------- pure-JAX reference ------------------------------


def mix_feedforward_ref(x, h, w, params):
    B, N, Cin = x.shape
    hidden = params["fc1_w"].shape[1]
    y = x.reshape(B * N, Cin) @ params["fc1_w"] + params["fc1_b"]
    y = y.reshape(B, h, w, hidden)
    rhs = params["conv_w"].reshape(3, 3, 1, hidden)
    y = jax.lax.conv_general_dilated(
        y, rhs, window_strides=(1, 1), padding="SAME",
        dimension_numbers=("NHWC", "HWIO", "NHWC"),
        feature_group_count=hidden,
    ) + params["conv_b"]
    y = jax.nn.gelu(y, approximate=False)
    y = y.reshape(B * N, hidden)
    out = y @ params["fc2_w"] + params["fc2_b"]
    return out.reshape(B, N, params["fc2_w"].shape[1])


# ----------------------------------- main -------------------------------------


if __name__ == "__main__":
    B, H, W = 2, 16, 16
    in_features, hidden_features, out_features = 8, 32, 8
    N = H * W

    key = jax.random.PRNGKey(0)
    kx, kp = jax.random.split(key)
    x = jax.random.normal(kx, (B, N, in_features), jnp.float32)
    params = make_params(kp, in_features, out_features, hidden_features)

    out = mix_feedforward(x, H, W, params)
    out = jax.block_until_ready(out)

    ref = mix_feedforward_ref(x, H, W, params)
    assert out.shape == (B, N, out_features)
    assert jnp.allclose(out, ref, rtol=2e-2, atol=2e-2)

    print("KERNEL_OK")
</pallas_src>

<mosaic_0001>
module attributes {stable_mosaic.version = 11 : i64} {
  func.func @_matmul_kernel(%arg0: i32, %arg1: i32, %arg2: i32, %arg3: memref<256x8xf32, #tpu.memory_space<vmem>>, %arg4: memref<8x128xbf16, #tpu.memory_space<vmem>>, %arg5: memref<1x128xf32, #tpu.memory_space<vmem>>, %arg6: memref<256x128xbf16, #tpu.memory_space<vmem>>, %arg7: memref<256x128xf32, #tpu.memory_space<vmem>>) attributes {dimension_semantics = [#tpu.dimension_semantics<parallel>, #tpu.dimension_semantics<parallel>, #tpu.dimension_semantics<arbitrary>], iteration_bounds = array<i64: 2, 1, 1>, scalar_prefetch = 0 : i64, scratch_operands = 1 : i64, tpu.core_type = #tpu.core_type<tc>, window_params = [{transform_indices = @transform_0, window_bounds = array<i64: 256, 8>}, {transform_indices = @transform_1, window_bounds = array<i64: 8, 128>}, {transform_indices = @transform_2, window_bounds = array<i64: 1, 128>}, {transform_indices = @transform_3, window_bounds = array<i64: 256, 128>}]} {
    %c0_i32 = arith.constant 0 : i32
    %0 = arith.cmpi eq, %arg2, %c0_i32 : i32
    %1 = arith.extui %0 : i1 to i32
    %c0_i32_0 = arith.constant 0 : i32
    %2 = arith.cmpi ne, %1, %c0_i32_0 : i32
    scf.if %2 {
      %cst_10 = arith.constant 0.000000e+00 : f32
      %13 = vector.broadcast %cst_10 : f32 to vector<256x128xf32>
      %c0_11 = arith.constant 0 : index
      %c0_12 = arith.constant 0 : index
      %14 = vector.load %arg7[%c0_11, %c0_12] : memref<256x128xf32, #tpu.memory_space<vmem>>, vector<256x128xf32>
      tpu.vector_store %arg7[%c0_11, %c0_12], %13 {strides = array<i32>} : memref<256x128xf32, #tpu.memory_space<vmem>>, vector<256x128xf32>,
    } else {
    }
    %c0 = arith.constant 0 : index
    %c0_1 = arith.constant 0 : index
    %3 = vector.load %arg3[%c0, %c0_1] : memref<256x8xf32, #tpu.memory_space<vmem>>, vector<256x8xf32>
    %4 = arith.truncf %3 : vector<256x8xf32> to vector<256x8xbf16>
    %c0_2 = arith.constant 0 : index
    %c0_3 = arith.constant 0 : index
    %5 = vector.load %arg7[%c0_2, %c0_3] : memref<256x128xf32, #tpu.memory_space<vmem>>, vector<256x128xf32>
    %c0_4 = arith.constant 0 : index
    %c0_5 = arith.constant 0 : index
    %6 = vector.load %arg4[%c0_4, %c0_5] : memref<8x128xbf16, #tpu.memory_space<vmem>>, vector<8x128xbf16>
    %cst = arith.constant dense<0.000000e+00> : vector<256x128xf32>
    %7 = tpu.matmul %4, %6, %cst {dimension_numbers = #tpu.dot_dimension_numbers<[1], [0], [0], [1], [0, 0, 1, 1], [], []>} : vector<256x8xbf16>, vector<8x128xbf16>, vector<256x128xf32> -> vector<256x128xf32>
    %8 = arith.addf %5, %7 : vector<256x128xf32>
    %c0_6 = arith.constant 0 : index
    %c0_7 = arith.constant 0 : index
    %9 = vector.load %arg7[%c0_6, %c0_7] : memref<256x128xf32, #tpu.memory_space<vmem>>, vector<256x128xf32>
    tpu.vector_store %arg7[%c0_6, %c0_7], %8 {strides = array<i32>} : memref<256x128xf32, #tpu.memory_space<vmem>>, vector<256x128xf32>,
    %c0_i32_8 = arith.constant 0 : i32
    %10 = arith.cmpi eq, %arg2, %c0_i32_8 : i32
    %11 = arith.extui %10 : i1 to i32
    %c0_i32_9 = arith.constant 0 : i32
    %12 = arith.cmpi ne, %11, %c0_i32_9 : i32
    scf.if %12 {
      %c0_10 = arith.constant 0 : index
      %c0_11 = arith.constant 0 : index
      %13 = vector.load %arg7[%c0_10, %c0_11] : memref<256x128xf32, #tpu.memory_space<vmem>>, vector<256x128xf32>
      %c0_12 = arith.constant 0 : index
      %c0_13 = arith.constant 0 : index
      %14 = vector.load %arg5[%c0_12, %c0_13] : memref<1x128xf32, #tpu.memory_space<vmem>>, vector<1x128xf32>
      %15 = vector.broadcast %14 : vector<1x128xf32> to vector<256x128xf32>
      %16 = arith.addf %13, %15 : vector<256x128xf32>
      %17 = arith.truncf %16 : vector<256x128xf32> to vector<256x128xbf16>
      %c0_14 = arith.constant 0 : index
      %c0_15 = arith.constant 0 : index
      %18 = vector.load %arg6[%c0_14, %c0_15] : memref<256x128xbf16, #tpu.memory_space<vmem>>, vector<256x128xbf16>
      tpu.vector_store %arg6[%c0_14, %c0_15], %17 {strides = array<i32>} : memref<256x128xbf16, #tpu.memory_space<vmem>>, vector<256x128xbf16>,
    } else {
    }
    return
  }
  func.func @transform_0(%arg0: i32, %arg1: i32, %arg2: i32) -> (i32, i32) {
    %c0_i32 = arith.constant 0 : i32
    return %arg0, %arg2 : i32, i32
  }
  func.func @transform_1(%arg0: i32, %arg1: i32, %arg2: i32) -> (i32, i32) {
    %c0_i32 = arith.constant 0 : i32
    return %arg2, %arg1 : i32, i32
  }
  func.func @transform_2(%arg0: i32, %arg1: i32, %arg2: i32) -> (i32, i32) {
    %c0_i32 = arith.constant 0 : i32
    %c0_i32_0 = arith.constant 0 : i32
    return %c0_i32, %arg1 : i32, i32
  }
  func.func @transform_3(%arg0: i32, %arg1: i32, %arg2: i32) -> (i32, i32) {
    %c0_i32 = arith.constant 0 : i32
    return %arg0, %arg1 : i32, i32
  }
}

</mosaic_0001>

<bundles_post_ra>
// kernel: tpu_custom_call.1
= control target key start
LH: loop header
LB: loop body
LE: loop exit
PB: predicated region body
PF: predicated region fallthrough
CT: control target
= control target key end

     0   :  { %8 = vsyncpa [#allocation4], 0  ;;  %s1630_s0 = inlined_call_operand.vmem [shape: f32[512,8], index: 0, kind: input, shape index: {}]   ;;  %s1631_s1 = inlined_call_operand.vmem [shape: bf16[8,128], index: 1, kind: input, shape index: {}]   ;;  %s1632_s2 = inlined_call_operand.vmem [shape: f32[1,128], index: 2, kind: input, shape index: {}]   ;;  %s1633_s3 = inlined_call_operand.hbm [shape: bf16[512,128], index: 3, kind: output, shape index: {}]  }
   0x1   :  { %10 = vsyncpa [#allocation4 + $0x1], 0  ;;  %s1404_s12 = smov 0   ;;  %s1406_s13 = smov 0  }
   0x2   :  { %s1408_s14 = smov 0   ;;  %s1410_s15 = smov 0  }
   0x3   :  { %s1412_s16 = smov 0   ;;  %s1414_s17 = smov 0  }
   0x4 LB: > { %s999_s18 = sadd.s32 4294967295, %s1379_s17   ;;  %s1000_s19 = sadd.s32 4294967294, %s1379_s17   ;;  %s1379_s17 = sphi %s1414_s17, %s16_s17   ;;  %s1375_s16 = sphi %s1412_s16, %s1640_s16   ;;  %s1371_s15 = sphi %s1410_s15, %s1639_s15   ;;  %s1367_s14 = sphi %s1408_s14, %s1638_s14   ;;  %s1363_s13 = sphi %s1406_s13, %s1637_s13   ;;  %s1359_s12 = sphi %s1404_s12, %s1636_s12  }
   0x5   : > { %s35_s20 = sadd.s32 1, %s1375_s16  ;;  %s126_s21 = sadd.s32 1, %s1367_s14 }
   0x6   : > { %p37_p0 = scmp.ge.s32.totalorder %s35_s20, 2  ;;  %p136_p1 = scmp.ne.s32.totalorder %s1367_s14, %s1363_s13 }
   0x7   : > { %p137_p2 = scmp.eq.s32.totalorder %s999_s18, 1  ;;  %p142_p3 = scmp.ne.s32.totalorder %s1363_s13, %s1359_s12 }
   0x8   : > { %s1642_s20 = smov (%p37_p0, %s35_s20), 0  ;;  %p143_p5 = scmp.eq.s32.totalorder %s1000_s19, 1 }
   0x9   : > { %p1444_p4 = por %p137_p2, %p136_p1  ;;  %s121_s23 = ssub.s32 %s1375_s16, %s1642_s20 }
   0xa   : > { %p1005_p6 = scmp.ge.s32.totalorder %s1379_s17, 1  ;;  %p124_p7 = scmp.eq.s32.totalorder %s121_s23, 0 }
   0xb   : > { %p1451_p8 = por %p143_p5, %p142_p3  ;;  %p189_p9 = scmp.lt.s32.totalorder %s1379_s17, 3 }
   0xc   : > { %s1457_s25 = scalar_select %p124_p7, %s1367_s14, %s126_s21  }
   0xd   : > { %p190_p10 = pnand %p1005_p6, %p189_p9 }
   0xe   : > { %s1007_s28 = sshll.u32 (!%p190_p10), %s1371_s15, 5  ;;  %s223_s6 = sand.u32 (!%p190_p10), 1, %s1363_s13  }
   0xf   : > { %193 = sbr.rel (%p190_p10) target bundleno = 269 (0x10d), region = 32  ;;  %p227_p11 = scmp.lt.s32.totalorder (!%p190_p10), %s1007_s28, 63 }
  0x10   : > { %s1006_s9 = sshll.u32 (!%p190_p10), %s223_s6, 7  ;;  %s1095_s11 = sshll.u32 (!%p190_p10), %s1371_s15, 11 }
  0x11   : > { %s1532_s10 = scalar_lea.vmem (!%p190_p10), [#allocation3], %s1006_s9  ;;  %s1576_s15 = scalar_lea.hbm (!%p190_p10), %s1633_s3, %s1095_s11 }
  0x12   : > { %s891_s18 = sshll.u32 (!%p190_p10), %s1532_s10, 4  ;;  %s1585_s23 = scalar_lea.sflag (!%p190_p10), [#allocation4], %s223_s6  ;;  %s1578_s18 = int_to_ptr.vmem [resolvable:$true] %s891_s18 }
  0x13   : > { %s1303_s26 = scalar_lea.vmem (!%p190_p10), %s1578_s18, 2048  ;;  %s1381_s27 = smov (!%p190_p10), [#allocation3]  }
  0x14   : > { %v363_v0 = vld [vmem:[%s1631_s1] sm:$0xf]  ;;  %vm413_vm0 = vcmask 1043456   ;;  %s1644_s28 = smov (!%p227_p11, %s1007_s28), 63  ;;  %vm364_vm1 = vcmask 64512   ;;  %p1304_p12 = scmp.ne.s32.totalorder %s1578_s18, %s1303_s26 }
  0x15   : > { %1244 = vmatprep.subr.msk.bf16.mxu0 %vm413_vm0, %v363_v0  ;;  %1245 = vmatprep.subr.msk.bf16.mxu1 %vm413_vm0, %v363_v0  ;;  %v415_v1 = vsel %vm413_vm0, %v363_v0, 0  ;;  %s1008_s29 = sshll.u32 %s1644_s28, 3  ;;  %v1520_v52 = vld [vmem:[%s1632_s2] ss:$0 sm:$0xff]  ;;  %s1307_s28 = sshll.u32 %s1381_s27, 4  ;;  %s1308_s28 = int_to_ptr.vmem [resolvable:$false] %s1307_s28 }
  0x16   : > { %1209 = vmatpush3.bf16.msra.mxu0 %v415_v1  ;;  %1243 = vmatpush3.bf16.msra.mxu1 %v415_v1  ;;  %s1466_s5 = scalar_lea.vmem %s1630_s0, %s1008_s29  ;;  %p1305_p13 = pnand %p1304_p12, %p1444_p4 }
  0x17   : > { %v283_v2 = vld [vmem:[%s1466_s5] sm:$0xff]  ;;  %v284_v3 = vld [vmem:[%s1466_s5 + $0x8] sm:$0xff]  ;;  %v285_v7 = vld [vmem:[%s1466_s5 + $0x10] sm:$0xff]  ;;  %s1309_s29 = scalar_lea.vmem %s1308_s28, 4096  ;;  %p1310_p1 = scmp.lt.s32.totalorder %s1578_s18, %s1308_s28 }
  0x18   : > { %v299_v4 = vld [vmem:[%s1466_s5 + $0x80] sm:$0xff]  ;;  %v315_v5 = vpack.c.bf16 %v284_v3, %v283_v2  ;;  %v300_v6 = vld [vmem:[%s1466_s5 + $0x88] sm:$0xff]  ;;  %v286_v8 = vld [vmem:[%s1466_s5 + $0x18] sm:$0xff]  ;;  %p1306_p0 = pneg %p1305_p13  ;;  %p1311_p2 = scmp.lt.s32.totalorder %s1309_s29, %s1303_s26 }
  0x19   : > { %v323_v9 = vpack.c.bf16 %v300_v6, %v299_v4  ;;  %v316_v10 = vpack.c.bf16 %v286_v8, %v285_v7  ;;  %v301_v11 = vld [vmem:[%s1466_s5 + $0x90] sm:$0xff]  ;;  %v302_v12 = vld [vmem:[%s1466_s5 + $0x98] sm:$0xff]  ;;  %v287_v13 = vld [vmem:[%s1466_s5 + $0x20] sm:$0xff] }
  0x1a   : > { %1210 = vmatprep.mubr.msk.bf16.mxu0 %vm364_vm1, %v315_v5  ;;  %v324_v14 = vpack.c.bf16 %v302_v12, %v301_v11  ;;  %v288_v15 = vld [vmem:[%s1466_s5 + $0x28] sm:$0xff]  ;;  %v303_v16 = vld [vmem:[%s1466_s5 + $0xa0] sm:$0xff]  ;;  %v289_v20 = vld [vmem:[%s1466_s5 + $0x30] sm:$0xff]  ;;  %p1312_p3 = por %p1311_p2, %p1310_p1 }
  0x1b   : > { %v304_v17 = vld [vmem:[%s1466_s5 + $0xa8] sm:$0xff]  ;;  %1226 = vmatprep.mubr.msk.bf16.mxu1 %vm364_vm1, %v323_v9  ;;  %1211 = vmatmul.mubr.msk.bf16.vlgmr.msra.gmra.mxu0 %vm364_vm1, %v316_v10  ;;  %v317_v18 = vpack.c.bf16 %v288_v15, %v287_v13  ;;  %v290_v21 = vld [vmem:[%s1466_s5 + $0x38] sm:$0xff]  ;;  %v305_v22 = vld [vmem:[%s1466_s5 + $0xb0] sm:$0xff] }
  0x1c   : > { %v325_v19 = vpack.c.bf16 %v304_v17, %v303_v16  ;;  %1227 = vmatmul.mubr.msk.bf16.vlgmr.msra.gmra.mxu1 %vm364_vm1, %v324_v14  ;;  %v306_v23 = vld [vmem:[%s1466_s5 + $0xb8] sm:$0xff]  ;;  %v291_v24 = vld [vmem:[%s1466_s5 + $0x40] sm:$0xff]  ;;  %v292_v25 = vld [vmem:[%s1466_s5 + $0x48] sm:$0xff]  ;;  %v318_v28 = vpack.c.bf16 %v290_v21, %v289_v20  ;;  %p1313_p5 = pnand %p1312_p3, %p1306_p0 }
  0x1d   : > { %1214 = vmatprep.mubr.msk.bf16.mxu0 %vm364_vm1, %v317_v18  ;;  %v307_v26 = vld [vmem:[%s1466_s5 + $0xc0] sm:$0xff]  ;;  %v308_v27 = vld [vmem:[%s1466_s5 + $0xc8] sm:$0xff]  ;;  %v326_v29 = vpack.c.bf16 %v306_v23, %v305_v22  ;;  %v319_v30 = vpack.c.bf16 %v292_v25, %v291_v24  ;;  %v293_v32 = vld [vmem:[%s1466_s5 + $0x50] sm:$0xff] }
  0x1e   : > { %1230 = vmatprep.mubr.msk.bf16.mxu1 %vm364_vm1, %v325_v19  ;;  %v327_v31 = vpack.c.bf16 %v308_v27, %v307_v26  ;;  %v294_v33 = vld [vmem:[%s1466_s5 + $0x58] sm:$0xff]  ;;  %v309_v34 = vld [vmem:[%s1466_s5 + $0xd0] sm:$0xff]  ;;  %v295_v36 = vld [vmem:[%s1466_s5 + $0x60] sm:$0xff] }
  0x1f   : > { %v310_v35 = vld [vmem:[%s1466_s5 + $0xd8] sm:$0xff]  ;;  %v296_v37 = vld [vmem:[%s1466_s5 + $0x68] sm:$0xff]  ;;  %v311_v38 = vld [vmem:[%s1466_s5 + $0xe0] sm:$0xff]  ;;  %v320_v40 = vpack.c.bf16 %v294_v33, %v293_v32 }
  0x20   : > { %v312_v39 = vld [vmem:[%s1466_s5 + $0xe8] sm:$0xff]  ;;  %v328_v41 = vpack.c.bf16 %v310_v35, %v309_v34  ;;  %v321_v42 = vpack.c.bf16 %v296_v37, %v295_v36  ;;  %v297_v44 = vld [vmem:[%s1466_s5 + $0x70] sm:$0xff]  ;;  %v298_v45 = vld [vmem:[%s1466_s5 + $0x78] sm:$0xff] }
  0x21   : > { %v329_v43 = vpack.c.bf16 %v312_v39, %v311_v38  ;;  %v313_v46 = vld [vmem:[%s1466_s5 + $0xf0] sm:$0xff]  ;;  %v314_v47 = vld [vmem:[%s1466_s5 + $0xf8] sm:$0xff]  ;;  %v322_v48 = vpack.c.bf16 %v298_v45, %v297_v44 }
  0x22   : > { %v330_v49 = vpack.c.bf16 %v314_v47, %v313_v46 }
  0x23   : > { %1215 = vmatmul.mubr.msk.bf16.gmra.mxu0 %vm364_vm1, %v318_v28 }
  0x24   : > { %1231 = vmatmul.mubr.msk.bf16.gmra.mxu1 %vm364_vm1, %v326_v29  ;;  %1218 = vmatprep.mubr.msk.bf16.mxu0 %vm364_vm1, %v319_v30 }
  0x25   : > { %1234 = vmatprep.mubr.msk.bf16.mxu1 %vm364_vm1, %v327_v31 }
  0x2b   : > { %1219 = vmatmul.mubr.msk.bf16.gmra.mxu0 %vm364_vm1, %v320_v40 }
  0x2c   : > { %1235 = vmatmul.mubr.msk.bf16.gmra.mxu1 %vm364_vm1, %v328_v41  ;;  %1222 = vmatprep.mubr.msk.bf16.mxu0 %vm364_vm1, %v321_v42 }
  0x2d   : > { %1238 = vmatprep.mubr.msk.bf16.mxu1 %vm364_vm1, %v329_v43 }
  0x33   : > { %1223 = vmatmul.mubr.msk.bf16.gmra.mxu0 %vm364_vm1, %v322_v48 }
  0x34   : > { %1239 = vmatmul.mubr.msk.bf16.gmra.mxu1 %vm364_vm1, %v330_v49 }
  0xdb   : > { %v1212_v50 = vpop.f32.mrf.mxu0 }
  0xdc   : > { %v1228_v51 = vpop.f32.mrf.mxu1  ;;  %v686_v56 = vadd.f32 %v1212_v50, %v1520_v52 }
  0xdd   : > { %v451_v53 = vpop.f32.mrf.mxu0  ;;  %v702_v59 = vadd.f32 %v1228_v51, %v1520_v52 }
  0xde   : > { %v515_v54 = vpop.f32.mrf.mxu1  ;;  %v684_v62 = vadd.f32 %v1520_v52, %v451_v53 }
  0xdf   : > { %v1213_v55 = vpop.f32.mrf.mxu0  ;;  %v700_v2 = vadd.f32 %v1520_v52, %v515_v54 }
  0xe0   : > { %v687_v57 = vadd.f32 %v1213_v55, %v1520_v52  ;;  %v1229_v58 = vpop.f32.mrf.mxu1 }
  0xe1   : > { %v703_v60 = vadd.f32 %v1229_v58, %v1520_v52  ;;  %v454_v61 = vpop.f32.mrf.mxu0 }
  0xe2   : > { %v1104_v63 = vpack.c.bf16 %v687_v57, %v686_v56  ;;  %v685_v0 = vadd.f32 %v1520_v52, %v454_v61  ;;  %v518_v1 = vpop.f32.mrf.mxu1 }
  0xe3   : > { %v1144_v3 = vpack.c.bf16 %v703_v60, %v702_v59  ;;  %v701_v4 = vadd.f32 %v1520_v52, %v518_v1  ;;  %v1216_v5 = vpop.f32.mrf.mxu0 }
  0xe4   : > { %1176 = vst [vmem:[%s1532_s10 + $0x8] sm:$0xff] %v1104_v63   ;;  %v1099_v6 = vpack.c.bf16 %v685_v0, %v684_v62  ;;  %v1232_v7 = vpop.f32.mrf.mxu1  ;;  %v690_v12 = vadd.f32 %v1216_v5, %v1520_v52 }
  0xe5   : > { %1184 = vst [vmem:[%s1532_s10 + $0x48] sm:$0xff] %v1144_v3   ;;  %v1139_v8 = vpack.c.bf16 %v701_v4, %v700_v2  ;;  %v467_v9 = vpop.f32.mrf.mxu0  ;;  %v706_v15 = vadd.f32 %v1232_v7, %v1520_v52 }
  0xe6   : > { %1100 = vst [vmem:[%s1532_s10] sm:$0xff] %v1099_v6   ;;  %v531_v10 = vpop.f32.mrf.mxu1  ;;  %v688_v18 = vadd.f32 %v1520_v52, %v467_v9 }
  0xe7   : > { %1183 = vst [vmem:[%s1532_s10 + $0x40] sm:$0xff] %v1139_v8   ;;  %v1217_v11 = vpop.f32.mrf.mxu0  ;;  %v704_v22 = vadd.f32 %v1520_v52, %v531_v10 }
  0xe8   : > { %v691_v13 = vadd.f32 %v1217_v11, %v1520_v52  ;;  %v1233_v14 = vpop.f32.mrf.mxu1 }
  0xe9   : > { %v707_v16 = vadd.f32 %v1233_v14, %v1520_v52  ;;  %v470_v17 = vpop.f32.mrf.mxu0 }
  0xea   : > { %v1114_v19 = vpack.c.bf16 %v691_v13, %v690_v12  ;;  %v689_v20 = vadd.f32 %v1520_v52, %v470_v17  ;;  %v534_v21 = vpop.f32.mrf.mxu1 }
  0xeb   : > { %v1154_v23 = vpack.c.bf16 %v707_v16, %v706_v15  ;;  %v705_v24 = vadd.f32 %v1520_v52, %v534_v21  ;;  %v1220_v25 = vpop.f32.mrf.mxu0 }
  0xec   : > { %1178 = vst [vmem:[%s1532_s10 + $0x18] sm:$0xff] %v1114_v19   ;;  %v1109_v26 = vpack.c.bf16 %v689_v20, %v688_v18  ;;  %v1236_v27 = vpop.f32.mrf.mxu1  ;;  %v694_v32 = vadd.f32 %v1220_v25, %v1520_v52 }
  0xed   : > { %1186 = vst [vmem:[%s1532_s10 + $0x58] sm:$0xff] %v1154_v23   ;;  %v1149_v28 = vpack.c.bf16 %v705_v24, %v704_v22  ;;  %v483_v29 = vpop.f32.mrf.mxu0  ;;  %v710_v35 = vadd.f32 %v1236_v27, %v1520_v52 }
  0xee   : > { %1177 = vst [vmem:[%s1532_s10 + $0x10] sm:$0xff] %v1109_v26   ;;  %v547_v30 = vpop.f32.mrf.mxu1  ;;  %v692_v38 = vadd.f32 %v1520_v52, %v483_v29 }
  0xef   : > { %1185 = vst [vmem:[%s1532_s10 + $0x50] sm:$0xff] %v1149_v28   ;;  %v1221_v31 = vpop.f32.mrf.mxu0  ;;  %v708_v42 = vadd.f32 %v1520_v52, %v547_v30 }
  0xf0   : > { %v695_v33 = vadd.f32 %v1221_v31, %v1520_v52  ;;  %v1237_v34 = vpop.f32.mrf.mxu1 }
  0xf1   : > { %v711_v36 = vadd.f32 %v1237_v34, %v1520_v52  ;;  %v486_v37 = vpop.f32.mrf.mxu0 }
  0xf2   : > { %v1124_v39 = vpack.c.bf16 %v695_v33, %v694_v32  ;;  %v693_v40 = vadd.f32 %v1520_v52, %v486_v37  ;;  %v550_v41 = vpop.f32.mrf.mxu1 }
  0xf3   : > { %v1164_v43 = vpack.c.bf16 %v711_v36, %v710_v35  ;;  %v709_v44 = vadd.f32 %v1520_v52, %v550_v41  ;;  %v1224_v45 = vpop.f32.mrf.mxu0 }
  0xf4   : > { %1180 = vst [vmem:[%s1532_s10 + $0x28] sm:$0xff] %v1124_v39   ;;  %v1119_v46 = vpack.c.bf16 %v693_v40, %v692_v38  ;;  %v1240_v47 = vpop.f32.mrf.mxu1  ;;  %v698_v53 = vadd.f32 %v1224_v45, %v1520_v52 }
  0xf5   : > { %1188 = vst [vmem:[%s1532_s10 + $0x68] sm:$0xff] %v1164_v43   ;;  %v1159_v48 = vpack.c.bf16 %v709_v44, %v708_v42  ;;  %v499_v49 = vpop.f32.mrf.mxu0  ;;  %v714_v56 = vadd.f32 %v1240_v47, %v1520_v52 }
  0xf6   : > { %1179 = vst [vmem:[%s1532_s10 + $0x20] sm:$0xff] %v1119_v46   ;;  %v563_v50 = vpop.f32.mrf.mxu1  ;;  %v696_v59 = vadd.f32 %v1520_v52, %v499_v49 }
  0xf7   : > { %1187 = vst [vmem:[%s1532_s10 + $0x60] sm:$0xff] %v1159_v48   ;;  %v1225_v51 = vpop.f32.mrf.mxu0  ;;  %v712_v63 = vadd.f32 %v1520_v52, %v563_v50 }
  0xf8   : > { %v699_v54 = vadd.f32 %v1225_v51, %v1520_v52  ;;  %v1241_v55 = vpop.f32.mrf.mxu1 }
  0xf9   : > { %v715_v57 = vadd.f32 %v1241_v55, %v1520_v52  ;;  %v502_v58 = vpop.f32.mrf.mxu0 }
  0xfa   : > { %v1134_v60 = vpack.c.bf16 %v699_v54, %v698_v53  ;;  %v697_v61 = vadd.f32 %v1520_v52, %v502_v58  ;;  %v566_v62 = vpop.f32.mrf.mxu1 }
  0xfb   : > { %v1174_v0 = vpack.c.bf16 %v715_v57, %v714_v56  ;;  %v713_v1 = vadd.f32 %v1520_v52, %v566_v62 }
  0xfc   : > { %1182 = vst [vmem:[%s1532_s10 + $0x38] sm:$0xff] %v1134_v60   ;;  %v1129_v2 = vpack.c.bf16 %v697_v61, %v696_v59 }
  0xfd   : > { %1190 = vst [vmem:[%s1532_s10 + $0x78] sm:$0xff] %v1174_v0   ;;  %v1169_v3 = vpack.c.bf16 %v713_v1, %v712_v63 }
  0xfe   : > { %1181 = vst [vmem:[%s1532_s10 + $0x30] sm:$0xff] %v1129_v2  }
  0xff   : > { %1189 = vst [vmem:[%s1532_s10 + $0x70] sm:$0xff] %v1169_v3  }
 0x100   : > { %1316 = shalt.err (!%p1313_p5)
}
 0x101   : > { %s1317_s30 = scalar_lea.hbm %s1576_s15, 2048  ;;  %s1321_s6 = scalar_lea.hbm %s1633_s3, 4096 }
 0x102   : > { %p1318_p6 = scmp.ne.s32.totalorder %s1576_s15, %s1317_s30  ;;  %p1322_p10 = scmp.lt.s32.totalorder %s1576_s15, %s1633_s3 }
 0x103   : > { %p1323_p11 = scmp.lt.s32.totalorder %s1321_s6, %s1317_s30 }
 0x104   : > { %p1319_p7 = pnand %p1318_p6, %p1444_p4 }
 0x105   : > { %p1324_p12 = por %p1323_p11, %p1322_p10 }
 0x106   : > { %p1320_p9 = pneg %p1319_p7 }
 0x108   : > { %p1325_p13 = pnand %p1324_p12, %p1320_p9 }
 0x10a   : > { %1328 = shalt.err (!%p1325_p13)
}
 0x10b   : > { %s1382_s9 = smov 64   ;;  %s1383_s10 = smov 4  }
 0x10c   : > { %1246 = dma.vmem_to_hbm [thread:$0]  (%p1444_p4), %s1578_s18, 2048, %s1576_s15, %s1585_s23, %s1382_s9, %s1382_s9, %s1383_s10  }
 0x10d PF: > { %p1252_p0 = scmp.ge.s32.totalorder %s1379_s17, 2  ;;  %s906_s11 = sand.u32 1, %s1359_s12  }
 0x10e   : > { %s907_s19 = scalar_lea.sflag [#allocation4], %s906_s11 }
 0x10f   : > { %p1249_p1 = pnand %p1252_p0, %p1451_p8 }
 0x111   : > { %p1250_p2 = pneg %p1249_p1 }
 0x113   : > { %1354 = dma.done.wait (%p1250_p2), %s907_s19, 2048  }
 0x114   : > { %1356 = vsyncadd (%p1250_p2), %s907_s19, 4294965248  ;;  %s16_s17 = sadd.s32 1, %s1379_s17   ;;  %s1636_s12 = smov %s1363_s13 }
 0x115   : > { %p13_p3 = scmp.ge.s32.totalorder %s16_s17, 4   ;;  %s1637_s13 = smov %s1367_s14 }
 0x116   : > { %s1638_s14 = smov %s1457_s25  ;;  %s1639_s15 = smov %s1375_s16 }
 0x117   : > { %s1640_s16 = smov %s1642_s20  ;;  %15 = sbr.rel (!%p13_p3) target bundleno = 4 (0x4), region = 81 }
 0x11c   :  { %912 = vsyncpa [#allocation4], 1 }
 0x11d   :  { %914 = vsyncpa [#allocation4 + $0x1], 1 }

</bundles_post_ra>
